<compile_context>
chip_gen: v7x
topology: tpu7x:2x2x1
jax: 0.10.0
libtpu: 0.0.40
codegen_flags: <defaults>
</compile_context>

<pallas_src>
import numpy as np
import jax
import jax.numpy as jnp
from jax.experimental import pallas as pl
from jax.experimental.pallas import tpu as pltpu


# ------------------------------------------------------------------ helpers --
def _adaptive_pool_matrix(out_size, in_size):
    """Row-stochastic matrix reproducing nn.AdaptiveAvgPool2d along one axis."""
    P = np.zeros((out_size, in_size), np.float32)
    for i in range(out_size):
        start = (i * in_size) // out_size
        end = -((-(i + 1) * in_size) // out_size)      # ceil((i+1)*in/out)
        P[i, start:end] = 1.0 / float(end - start)
    return P


def _bilinear_matrix(out_size, in_size):
    """F.interpolate(mode='bilinear', align_corners=True) weights along one axis."""
    U = np.zeros((out_size, in_size), np.float32)
    if in_size == 1:
        U[:, 0] = 1.0
        return U
    if out_size == 1:
        U[0, 0] = 1.0
        return U
    scale = (in_size - 1) / (out_size - 1)
    for o in range(out_size):
        src = o * scale
        i0 = min(int(np.floor(src)), in_size - 1)
        i1 = min(i0 + 1, in_size - 1)
        frac = src - i0
        U[o, i0] += 1.0 - frac
        U[o, i1] += frac
    return U


def _fold_bn(gamma, beta, mean, var, eps=1e-5):
    scale = gamma / jnp.sqrt(var + eps)
    bias = beta - mean * scale
    return scale.astype(jnp.float32), bias.astype(jnp.float32)


def _pick_row_tile(H):
    """Largest divisor of H that is <= H/2 (so the row-block axis has >= 2 steps)."""
    if H <= 8:
        return H
    best = 1
    for t in range(1, H // 2 + 1):
        if H % t == 0:
            best = t
    return best


def _pick_channel_tile(Cin):
    if Cin <= 512:
        return Cin
    for ct in (512, 256, 128):
        if Cin % ct == 0:
            return ct
    return Cin


def _const_spec(shape):
    """BlockSpec for a grid-invariant operand; single-buffered when supported."""
    nd = len(shape)
    index_map = lambda *args: (0,) * nd
    try:
        return pl.BlockSpec(shape, index_map, pipeline_mode=pl.Buffered(1))
    except Exception:                 # older jax without pipeline_mode / Buffered
        return pl.BlockSpec(shape, index_map)


def _nbytes(shape, itemsize):
    n = itemsize
    for s in shape:
        n *= s
    return n


def _build_pool_matrix(bin_sizes, H, W, Wp):
    """Stacked adaptive-pool matrix for all bins against the width-padded layout."""
    rows = []
    for b in bin_sizes:
        Ph = _adaptive_pool_matrix(b, H)                # (b, H)
        Pw = _adaptive_pool_matrix(b, W)                # (b, W)
        Pwp = np.zeros((b, Wp), np.float32)
        Pwp[:, 1:W + 1] = Pw                            # cols 0 and >= W+1 are pad
        rows.append(np.kron(Ph, Pwp))                   # (b*b, H*Wp)
    return np.concatenate(rows, axis=0)                 # (BBTOT, H*Wp)


def _build_upsample_windows(bin_sizes, H, W, Wp, TR, RB, BBMAX):
    """Per-(stage, row-block) bilinear upsample matrices producing the padded
    (TR+2, Wp) window directly (zero rows/cols ARE the 3x3-conv padding)."""
    S = len(bin_sizes)
    out = np.zeros((S, RB, (TR + 2) * Wp, BBMAX), np.float32)
    for s, b in enumerate(bin_sizes):
        Uh = _bilinear_matrix(H, b)                     # (H, b)
        Uw = _bilinear_matrix(W, b)                     # (W, b)
        Uwp = np.zeros((Wp, b), np.float32)
        Uwp[1:W + 1, :] = Uw                            # rows 0 and >= W+1 are pad
        for rb in range(RB):
            Uhw = np.zeros((TR + 2, b), np.float32)
            for r in range(TR + 2):
                h = rb * TR + r - 1                     # padded row -> image row
                if 0 <= h < H:
                    Uhw[r] = Uh[h]
            out[s, rb, :, :b * b] = np.kron(Uhw, Uwp)   # ((TR+2)*Wp, b*b)
    return out


# ------------------------------------------------------------------ kernels --
def _make_stage_kernel(S, H, Wp, CT, Cout, bin_sizes, NCB):
    """Pyramid stages: adaptive pool (stacked matmul) -> 1x1 conv (fused, BN
    folded, reduced over Cin blocks) -> bias -> ReLU -> small bf16 z maps."""
    offs = np.cumsum([0] + [b * b for b in bin_sizes]).tolist()

    def kernel(xw_ref, pm_ref, wc_ref, bias_ref, z_ref, acc_ref):
        k = pl.program_id(1)

        @pl.when(k == 0)
        def _():
            acc_ref[...] = jnp.zeros_like(acc_ref)

        xf = xw_ref[0].reshape(H * Wp, CT)                         # layout-free
        pooled = jnp.dot(pm_ref[...], xf,
                         preferred_element_type=jnp.float32)       # (BBTOT, CT)
        acc_ref[...] += jnp.dot(pooled.astype(jnp.bfloat16), wc_ref[...],
                                preferred_element_type=jnp.float32)  # (BBTOT, S*Cout)

        @pl.when(k == NCB - 1)
        def _():
            full = jnp.maximum(acc_ref[...] + bias_ref[...], 0.0)
            z_ref[...] = jnp.zeros_like(z_ref)      # zero-pad rows beyond b*b
            for s in range(S):
                b2 = bin_sizes[s] * bin_sizes[s]
                z_ref[0, s, 0:b2, :] = full[offs[s]:offs[s] + b2,
                                            s * Cout:(s + 1) * Cout].astype(z_ref.dtype)

    return kernel


def _make_bottleneck_kernel(NCB, S, TR, W, Wp, CT, Cout, BBMAX):
    """3x3 bottleneck conv + BN bias + ReLU, tiled over (batch, row blocks) with
    the Ccat reduction as the last (arbitrary) grid axis.  k < NCB: a Cin block
    of the original features; k >= NCB: one pyramid stage (upsampled on the fly).
    The 9 taps of one contribution are accumulated in registers and added to the
    resident output block with a single small RMW."""
    K = NCB + S
    RW = (TR + 2) * Wp
    NOUT = 9 * Cout

    def accumulate_taps(res, o_ref):
        res = res.reshape(TR + 2, Wp, NOUT)                        # layout-free
        part = jnp.zeros((TR, W, Cout), jnp.float32)
        for dy in range(3):
            r = res[dy:dy + TR]
            for dx in range(3):
                c0 = (dy * 3 + dx) * Cout
                part = part + r[:, dx:dx + W, c0:c0 + Cout]
        o_ref[0] += part

    def kernel(xwin_ref, w3x_ref, z_ref, um_ref, w3z_ref, bnb_ref, o_ref):
        k = pl.program_id(2)

        @pl.when(k == 0)
        def _():                                          # init with folded-BN bias
            o_ref[...] = jnp.zeros((1, TR, W, Cout), jnp.float32) + bnb_ref[...]

        @pl.when(k < NCB)
        def _():                                          # original-feature block
            rows = xwin_ref[0, 0]                                   # (TR+2, Wp, CT)
            res = jnp.dot(rows.reshape(RW, CT), w3x_ref[0],
                          preferred_element_type=jnp.float32)       # (RW, 9*Cout)
            accumulate_taps(res, o_ref)

        @pl.when(k >= NCB)
        def _():                                          # one pyramid stage
            up = jnp.dot(um_ref[0, 0], z_ref[0, 0],
                         preferred_element_type=jnp.float32)        # (RW, Cout)
            res = jnp.dot(up.astype(jnp.bfloat16), w3z_ref[0],
                          preferred_element_type=jnp.float32)       # (RW, 9*Cout)
            accumulate_taps(res, o_ref)

        @pl.when(k == K - 1)
        def _():
            o_ref[...] = jnp.maximum(o_ref[...], 0.0)

    return kernel


# ------------------------------------------------------------------ wrapper --
def psp_forward(x_nchw, params):
    """Forward of _PspModule.  Input/output are NCHW float32 like the PyTorch module."""
    x = jnp.transpose(x_nchw, (0, 2, 3, 1)).astype(jnp.bfloat16)     # -> NHWC
    N, H, W, Cin = x.shape
    bin_sizes = params["bin_sizes"]
    S = len(bin_sizes)
    Cout = params["bottleneck"]["bias"].shape[-1]
    BBMAX = max(b * b for b in bin_sizes)
    BBTOT = sum(b * b for b in bin_sizes)

    # ---- tiling choices ------------------------------------------------------
    TR = _pick_row_tile(H)              # output-row tile (divides H)
    RB = H // TR
    CT = _pick_channel_tile(Cin)        # Cin reduction tile (divides Cin)
    NCB = Cin // CT
    K = NCB + S                         # Ccat reduction steps
    Wp = ((W + 2 + 15) // 16) * 16      # 1 left pad + >=1 right pad, 16-multiple

    # ---- wrapper-side padded / windowed operands (XLA pads, read once) -------
    xw = jnp.pad(x, ((0, 0), (0, 0), (1, Wp - W - 1), (0, 0)))       # (N,H,Wp,Cin)
    xr = jnp.pad(xw, ((0, 0), (1, 1), (0, 0), (0, 0)))               # (N,H+2,Wp,Cin)
    xwin = jnp.stack([xr[:, rb * TR: rb * TR + TR + 2] for rb in range(RB)],
                     axis=1)                                         # (N,RB,TR+2,Wp,Cin)

    PM = jnp.asarray(_build_pool_matrix(bin_sizes, H, W, Wp), jnp.bfloat16)
    UMW = jnp.asarray(_build_upsample_windows(bin_sizes, H, W, Wp, TR, RB, BBMAX),
                      jnp.bfloat16)                                  # (S,RB,RW,BBMAX)

    Wc_cat = jnp.concatenate([st["Wc"] for st in params["stages"]], axis=1)
    bias_cat = jnp.concatenate([st["bias"] for st in params["stages"]], axis=1)

    w3full = params["bottleneck"]["w3"]                              # (Ccat, 9*Cout) bf16
    w3x = w3full[:Cin].reshape(NCB, CT, 9 * Cout)
    w3z = w3full[Cin:].reshape(S, Cout, 9 * Cout)
    bnb = params["bottleneck"]["bias"]                               # (1, Cout) f32

    # ---- kernel 1: pyramid pooling + fused 1x1 conv + ReLU -------------------
    vmem1 = int(1.5 * (2 * _nbytes((1, H, Wp, CT), 2)
                       + 1 * _nbytes((BBTOT, H * Wp), 2)
                       + 2 * _nbytes((CT, S * Cout), 2)
                       + 1 * _nbytes((1, S * Cout), 2)
                       + 2 * _nbytes((1, S, BBMAX, Cout), 2)
                       + 1 * _nbytes((BBTOT, S * Cout), 4))) + (4 << 20)
    vmem1 = min(max(vmem1, 32 << 20), 96 << 20)
    z_all = pl.pallas_call(
        _make_stage_kernel(S, H, Wp, CT, Cout, bin_sizes, NCB),
        out_shape=jax.ShapeDtypeStruct((N, S, BBMAX, Cout), jnp.bfloat16),
        grid=(N, NCB),
        in_specs=[
            pl.BlockSpec((1, H, Wp, CT), lambda n, k: (n, 0, 0, k)),
            _const_spec((BBTOT, H * Wp)),
            pl.BlockSpec((CT, S * Cout), lambda n, k: (k, 0)),
            _const_spec((1, S * Cout)),
        ],
        out_specs=pl.BlockSpec((1, S, BBMAX, Cout), lambda n, k: (n, 0, 0, 0)),
        scratch_shapes=[pltpu.VMEM((BBTOT, S * Cout), jnp.float32)],
        compiler_params=pltpu.CompilerParams(
            dimension_semantics=("parallel", "arbitrary"),
            vmem_limit_bytes=vmem1),
    )(xw, PM, Wc_cat, bias_cat)

    # ---- kernel 2: 3x3 bottleneck conv + BN + ReLU, tiled (batch, rows, Ccat) -
    vmem2 = int(1.5 * (2 * _nbytes((1, 1, TR + 2, Wp, CT), 2)
                       + 2 * _nbytes((1, CT, 9 * Cout), 2)
                       + 2 * _nbytes((1, 1, BBMAX, Cout), 2)
                       + 2 * _nbytes((1, 1, (TR + 2) * Wp, BBMAX), 2)
                       + 2 * _nbytes((1, Cout, 9 * Cout), 2)
                       + 1 * _nbytes((1, Cout), 4)
                       + 2 * _nbytes((1, TR, W, Cout), 4))) + (4 << 20)
    vmem2 = min(max(vmem2, 32 << 20), 96 << 20)

    def _cin_blk(k):
        return jnp.minimum(k, NCB - 1)

    def _stage_blk(k):
        return jnp.minimum(jnp.maximum(k - NCB, 0), S - 1)

    out_nhwc = pl.pallas_call(
        _make_bottleneck_kernel(NCB, S, TR, W, Wp, CT, Cout, BBMAX),
        out_shape=jax.ShapeDtypeStruct((N, H, W, Cout), jnp.float32),
        grid=(N, RB, K),
        in_specs=[
            pl.BlockSpec((1, 1, TR + 2, Wp, CT),
                         lambda n, rb, k: (n, rb, 0, 0, _cin_blk(k))),
            pl.BlockSpec((1, CT, 9 * Cout),
                         lambda n, rb, k: (_cin_blk(k), 0, 0)),
            pl.BlockSpec((1, 1, BBMAX, Cout),
                         lambda n, rb, k: (n, _stage_blk(k), 0, 0)),
            pl.BlockSpec((1, 1, (TR + 2) * Wp, BBMAX),
                         lambda n, rb, k: (_stage_blk(k), rb, 0, 0)),
            pl.BlockSpec((1, Cout, 9 * Cout),
                         lambda n, rb, k: (_stage_blk(k), 0, 0)),
            _const_spec((1, Cout)),
        ],
        out_specs=pl.BlockSpec((1, TR, W, Cout), lambda n, rb, k: (n, rb, 0, 0)),
        compiler_params=pltpu.CompilerParams(
            dimension_semantics=("parallel", "parallel", "arbitrary"),
            vmem_limit_bytes=vmem2),
    )(xwin, w3x, z_all, UMW, w3z, bnb)

    # Keep NCHW f32 for drop-in parity (downstream could consume NHWC/bf16 directly).
    return jnp.transpose(out_nhwc, (0, 3, 1, 2))


# ------------------------------------------------------------------- params --
def init_params(key, in_channels, bin_sizes):
    S = len(bin_sizes)
    Cout = in_channels // S
    Ccat = in_channels + Cout * S
    keys = iter(jax.random.split(key, 5 * S + 5))

    stages = []
    for _b in bin_sizes:
        wc = 0.1 * jax.random.normal(next(keys), (Cout, in_channels))
        gamma = 1.0 + 0.1 * jax.random.normal(next(keys), (Cout,))
        beta = 0.1 * jax.random.normal(next(keys), (Cout,))
        mean = 0.1 * jax.random.normal(next(keys), (Cout,))
        var = 1.0 + 0.1 * jnp.abs(jax.random.normal(next(keys), (Cout,)))
        sc, bi = _fold_bn(gamma, beta, mean, var)
        stages.append(dict(Wc=(wc.T * sc[None, :]).astype(jnp.bfloat16),  # (Cin, Cout)
                           bias=bi.reshape(1, Cout)))

    wb = 0.1 * jax.random.normal(next(keys), (Cout, Ccat, 3, 3))
    gamma = 1.0 + 0.1 * jax.random.normal(next(keys), (Cout,))
    beta = 0.1 * jax.random.normal(next(keys), (Cout,))
    mean = 0.1 * jax.random.normal(next(keys), (Cout,))
    var = 1.0 + 0.1 * jnp.abs(jax.random.normal(next(keys), (Cout,)))
    sc, bi = _fold_bn(gamma, beta, mean, var)
    # (Cout, Ccat, ky, kx) -> (Ccat, ky, kx, Cout) * BN scale -> (Ccat, 9*Cout)
    w3 = (jnp.transpose(wb, (1, 2, 3, 0)) * sc).reshape(Ccat, 9 * Cout)
    bottleneck = dict(w3=w3.astype(jnp.bfloat16), bias=bi.reshape(1, Cout))
    return dict(stages=stages, bottleneck=bottleneck, bin_sizes=tuple(bin_sizes))


# ------------------------------------------------------------- pure-JAX ref --
def ref_forward(x_nchw, params):
    x = jnp.transpose(x_nchw, (0, 2, 3, 1)).astype(jnp.float32)      # NHWC
    N, H, W, _ = x.shape
    bin_sizes = params["bin_sizes"]
    Cout = params["bottleneck"]["bias"].shape[-1]
    pyr = [x]
    for s, b in enumerate(bin_sizes):
        st = params["stages"][s]
        Ph = jnp.asarray(_adaptive_pool_matrix(b, H))
        Pw = jnp.asarray(_adaptive_pool_matrix(b, W))
        Uh = jnp.asarray(_bilinear_matrix(H, b))
        Uw = jnp.asarray(_bilinear_matrix(W, b))
        pooled = jnp.einsum('ih,nhwc->niwc', Ph, x)
        pooled = jnp.einsum('jw,niwc->nijc', Pw, pooled)
        z = jnp.maximum(jnp.einsum('nijc,co->nijo', pooled,
                                   st["Wc"].astype(jnp.float32)) + st["bias"], 0.0)
        up = jnp.einsum('hi,nijo->nhjo', Uh, z)
        up = jnp.einsum('wj,nhjo->nhwo', Uw, up)
        pyr.append(up)
    xcat = jnp.concatenate(pyr, axis=-1)
    xpad = jnp.pad(xcat, ((0, 0), (1, 1), (1, 1), (0, 0)))
    bt = params["bottleneck"]
    w3 = bt["w3"].astype(jnp.float32).reshape(-1, 3, 3, Cout)        # (Ccat, ky, kx, o)
    acc = jnp.zeros((N, H, W, Cout), jnp.float32) + bt["bias"]
    for ky in range(3):
        for kx in range(3):
            acc = acc + jnp.einsum('nhwc,co->nhwo',
                                   xpad[:, ky:ky + H, kx:kx + W, :], w3[:, ky, kx, :])
    return jnp.transpose(jnp.maximum(acc, 0.0), (0, 3, 1, 2))


# --------------------------------------------------------------------- main --
if __name__ == "__main__":
    N, Cin, H, W = 2, 8, 16, 16
    bin_sizes = (1, 2, 4, 8)

    key = jax.random.PRNGKey(0)
    kx_, kp = jax.random.split(key)
    x_nchw = jax.random.normal(kx_, (N, Cin, H, W), dtype=jnp.float32)
    params = init_params(kp, Cin, bin_sizes)

    out = jax.block_until_ready(psp_forward(x_nchw, params))
    ref = jax.block_until_ready(ref_forward(x_nchw, params))

    assert out.shape == (N, Cin // len(bin_sizes), H, W), out.shape
    # bf16 matmul operands (f32 accumulation) vs f32 reference -> loosened tolerance
    np.testing.assert_allclose(np.asarray(out), np.asarray(ref),
                               rtol=2e-2, atol=2e-2)
    print("KERNEL_OK")
</pallas_src>

<mosaic_0001>
module attributes {stable_mosaic.version = 11 : i64} {
  func.func @kernel(%arg0: i32, %arg1: i32, %arg2: memref<1x16x32x8xbf16, #tpu.memory_space<vmem>>, %arg3: memref<85x512xbf16, #tpu.memory_space<vmem>>, %arg4: memref<8x8xbf16, #tpu.memory_space<vmem>>, %arg5: memref<1x8xf32, #tpu.memory_space<vmem>>, %arg6: memref<1x4x64x2xbf16, #tpu.memory_space<vmem>>, %arg7: memref<85x8xf32, #tpu.memory_space<vmem>>) attributes {dimension_semantics = [#tpu.dimension_semantics<parallel>, #tpu.dimension_semantics<arbitrary>], iteration_bounds = array<i64: 2, 1>, scalar_prefetch = 0 : i64, scratch_operands = 1 : i64, tpu.core_type = #tpu.core_type<tc>, window_params = [{transform_indices = @transform_0, window_bounds = array<i64: 1, 16, 32, 8>}, {pipeline_mode = #tpu.pipeline_mode<synchronous>, transform_indices = @transform_1, window_bounds = array<i64: 85, 512>}, {transform_indices = @transform_2, window_bounds = array<i64: 8, 8>}, {pipeline_mode = #tpu.pipeline_mode<synchronous>, transform_indices = @transform_3, window_bounds = array<i64: 1, 8>}, {transform_indices = @transform_4, window_bounds = array<i64: 1, 4, 64, 2>}]} {
    %c0_i32 = arith.constant 0 : i32
    %0 = arith.cmpi eq, %arg1, %c0_i32 : i32
    %1 = arith.extui %0 : i1 to i32
    %c0_i32_0 = arith.constant 0 : i32
    %2 = arith.cmpi ne, %1, %c0_i32_0 : i32
    scf.if %2 {
      %cst_15 = arith.constant 0.000000e+00 : f32
      %17 = vector.broadcast %cst_15 : f32 to vector<85x8xf32>
      %c0_16 = arith.constant 0 : index
      %c0_17 = arith.constant 0 : index
      %18 = vector.load %arg7[%c0_16, %c0_17] : memref<85x8xf32, #tpu.memory_space<vmem>>, vector<85x8xf32>
      tpu.vector_store %arg7[%c0_16, %c0_17], %17 {strides = array<i32>} : memref<85x8xf32, #tpu.memory_space<vmem>>, vector<85x8xf32>,
    } else {
    }
    %c0 = arith.constant 0 : index
    %c0_1 = arith.constant 0 : index
    %c0_2 = arith.constant 0 : index
    %c0_3 = arith.constant 0 : index
    %3 = vector.load %arg2[%c0, %c0_1, %c0_2, %c0_3] : memref<1x16x32x8xbf16, #tpu.memory_space<vmem>>, vector<1x16x32x8xbf16>
    %4 = vector.shape_cast %3 : vector<1x16x32x8xbf16> to vector<16x32x8xbf16>
    %5 = vector.shape_cast %4 : vector<16x32x8xbf16> to vector<512x8xbf16>
    %c0_4 = arith.constant 0 : index
    %c0_5 = arith.constant 0 : index
    %6 = vector.load %arg3[%c0_4, %c0_5] : memref<85x512xbf16, #tpu.memory_space<vmem>>, vector<85x512xbf16>
    %cst = arith.constant dense<0.000000e+00> : vector<85x8xf32>
    %7 = tpu.matmul %6, %5, %cst {dimension_numbers = #tpu.dot_dimension_numbers<[1], [0], [0], [1], [0, 0, 1, 1], [], []>} : vector<85x512xbf16>, vector<512x8xbf16>, vector<85x8xf32> -> vector<85x8xf32>
    %c0_6 = arith.constant 0 : index
    %c0_7 = arith.constant 0 : index
    %8 = vector.load %arg7[%c0_6, %c0_7] : memref<85x8xf32, #tpu.memory_space<vmem>>, vector<85x8xf32>
    %9 = arith.truncf %7 : vector<85x8xf32> to vector<85x8xbf16>
    %c0_8 = arith.constant 0 : index
    %c0_9 = arith.constant 0 : index
    %10 = vector.load %arg4[%c0_8, %c0_9] : memref<8x8xbf16, #tpu.memory_space<vmem>>, vector<8x8xbf16>
    %cst_10 = arith.constant dense<0.000000e+00> : vector<85x8xf32>
    %11 = tpu.matmul %9, %10, %cst_10 {dimension_numbers = #tpu.dot_dimension_numbers<[1], [0], [0], [1], [0, 0, 1, 1], [], []>} : vector<85x8xbf16>, vector<8x8xbf16>, vector<85x8xf32> -> vector<85x8xf32>
    %12 = arith.addf %8, %11 : vector<85x8xf32>
    %c0_11 = arith.constant 0 : index
    %c0_12 = arith.constant 0 : index
    %13 = vector.load %arg7[%c0_11, %c0_12] : memref<85x8xf32, #tpu.memory_space<vmem>>, vector<85x8xf32>
    tpu.vector_store %arg7[%c0_11, %c0_12], %12 {strides = array<i32>} : memref<85x8xf32, #tpu.memory_space<vmem>>, vector<85x8xf32>,
    %c0_i32_13 = arith.constant 0 : i32
    %14 = arith.cmpi eq, %arg1, %c0_i32_13 : i32
    %15 = arith.extui %14 : i1 to i32
    %c0_i32_14 = arith.constant 0 : i32
    %16 = arith.cmpi ne, %15, %c0_i32_14 : i32
    scf.if %16 {
      %c0_15 = arith.constant 0 : index
      %c0_16 = arith.constant 0 : index
      %17 = vector.load %arg7[%c0_15, %c0_16] : memref<85x8xf32, #tpu.memory_space<vmem>>, vector<85x8xf32>
      %c0_17 = arith.constant 0 : index
      %c0_18 = arith.constant 0 : index
      %18 = vector.load %arg5[%c0_17, %c0_18] : memref<1x8xf32, #tpu.memory_space<vmem>>, vector<1x8xf32>
      %19 = vector.broadcast %18 : vector<1x8xf32> to vector<85x8xf32>
      %20 = arith.addf %17, %19 : vector<85x8xf32>
      %cst_19 = arith.constant 0.000000e+00 : f32
      %21 = vector.broadcast %cst_19 : f32 to vector<85x8xf32>
      %22 = arith.maximumf %20, %21 : vector<85x8xf32>
      %cst_20 = arith.constant 0.000000e+00 : bf16
      %23 = vector.broadcast %cst_20 : bf16 to vector<1x4x64x2xbf16>
      %c0_21 = arith.constant 0 : index
      %c0_22 = arith.constant 0 : index
      %c0_23 = arith.constant 0 : index
      %c0_24 = arith.constant 0 : index
      %24 = vector.load %arg6[%c0_21, %c0_22, %c0_23, %c0_24] : memref<1x4x64x2xbf16, #tpu.memory_space<vmem>>, vector<1x4x64x2xbf16>
      tpu.vector_store %arg6[%c0_21, %c0_22, %c0_23, %c0_24], %23 {strides = array<i32>} : memref<1x4x64x2xbf16, #tpu.memory_space<vmem>>, vector<1x4x64x2xbf16>,
      %25 = vector.extract_strided_slice %22 {offsets = [0, 0], sizes = [1, 2], strides = [1, 1]} : vector<85x8xf32> to vector<1x2xf32>
      %26 = arith.truncf %25 : vector<1x2xf32> to vector<1x2xbf16>
      %c0_25 = arith.constant 0 : index
      %c0_26 = arith.constant 0 : index
      %c0_27 = arith.constant 0 : index
      %c0_28 = arith.constant 0 : index
      %27 = vector.load %arg6[%c0_25, %c0_26, %c0_27, %c0_28] : memref<1x4x64x2xbf16, #tpu.memory_space<vmem>>, vector<1x1x1x2xbf16>
      %28 = vector.shape_cast %27 : vector<1x1x1x2xbf16> to vector<1x2xbf16>
      %29 = vector.shape_cast %26 : vector<1x2xbf16> to vector<1x1x1x2xbf16>
      tpu.vector_store %arg6[%c0_25, %c0_26, %c0_27, %c0_28], %29 {strides = array<i32>} : memref<1x4x64x2xbf16, #tpu.memory_space<vmem>>, vector<1x1x1x2xbf16>,
      %30 = vector.extract_strided_slice %22 {offsets = [1, 2], sizes = [4, 2], strides = [1, 1]} : vector<85x8xf32> to vector<4x2xf32>
      %31 = arith.truncf %30 : vector<4x2xf32> to vector<4x2xbf16>
      %c0_29 = arith.constant 0 : index
      %c1 = arith.constant 1 : index
      %c0_30 = arith.constant 0 : index
      %c0_31 = arith.constant 0 : index
      %32 = vector.load %arg6[%c0_29, %c1, %c0_30, %c0_31] : memref<1x4x64x2xbf16, #tpu.memory_space<vmem>>, vector<1x1x4x2xbf16>
      %33 = vector.shape_cast %32 : vector<1x1x4x2xbf16> to vector<4x2xbf16>
      %34 = vector.shape_cast %31 : vector<4x2xbf16> to vector<1x1x4x2xbf16>
      tpu.vector_store %arg6[%c0_29, %c1, %c0_30, %c0_31], %34 {strides = array<i32>} : memref<1x4x64x2xbf16, #tpu.memory_space<vmem>>, vector<1x1x4x2xbf16>,
      %35 = vector.extract_strided_slice %22 {offsets = [5, 4], sizes = [16, 2], strides = [1, 1]} : vector<85x8xf32> to vector<16x2xf32>
      %36 = arith.truncf %35 : vector<16x2xf32> to vector<16x2xbf16>
      %c0_32 = arith.constant 0 : index
      %c2 = arith.constant 2 : index
      %c0_33 = arith.constant 0 : index
      %c0_34 = arith.constant 0 : index
      %37 = vector.load %arg6[%c0_32, %c2, %c0_33, %c0_34] : memref<1x4x64x2xbf16, #tpu.memory_space<vmem>>, vector<1x1x16x2xbf16>
      %38 = vector.shape_cast %37 : vector<1x1x16x2xbf16> to vector<16x2xbf16>
      %39 = vector.shape_cast %36 : vector<16x2xbf16> to vector<1x1x16x2xbf16>
      tpu.vector_store %arg6[%c0_32, %c2, %c0_33, %c0_34], %39 {strides = array<i32>} : memref<1x4x64x2xbf16, #tpu.memory_space<vmem>>, vector<1x1x16x2xbf16>,
      %40 = vector.extract_strided_slice %22 {offsets = [21, 6], sizes = [64, 2], strides = [1, 1]} : vector<85x8xf32> to vector<64x2xf32>
      %41 = arith.truncf %40 : vector<64x2xf32> to vector<64x2xbf16>
      %c0_35 = arith.constant 0 : index
      %c3 = arith.constant 3 : index
      %c0_36 = arith.constant 0 : index
      %c0_37 = arith.constant 0 : index
      %42 = vector.load %arg6[%c0_35, %c3, %c0_36, %c0_37] : memref<1x4x64x2xbf16, #tpu.memory_space<vmem>>, vector<1x1x64x2xbf16>
      %43 = vector.shape_cast %42 : vector<1x1x64x2xbf16> to vector<64x2xbf16>
      %44 = vector.shape_cast %41 : vector<64x2xbf16> to vector<1x1x64x2xbf16>
      tpu.vector_store %arg6[%c0_35, %c3, %c0_36, %c0_37], %44 {strides = array<i32>} : memref<1x4x64x2xbf16, #tpu.memory_space<vmem>>, vector<1x1x64x2xbf16>,
    } else {
    }
    return
  }
  func.func @transform_0(%arg0: i32, %arg1: i32) -> (i32, i32, i32, i32) {
    %c0_i32 = arith.constant 0 : i32
    %c0_i32_0 = arith.constant 0 : i32
    %c0_i32_1 = arith.constant 0 : i32
    return %arg0, %c0_i32, %c0_i32_0, %arg1 : i32, i32, i32, i32
  }
  func.func @transform_1(%arg0: i32, %arg1: i32) -> (i32, i32) {
    %c0_i32 = arith.constant 0 : i32
    %c0_i32_0 = arith.constant 0 : i32
    %c0_i32_1 = arith.constant 0 : i32
    return %c0_i32, %c0_i32_0 : i32, i32
  }
  func.func @transform_2(%arg0: i32, %arg1: i32) -> (i32, i32) {
    %c0_i32 = arith.constant 0 : i32
    %c0_i32_0 = arith.constant 0 : i32
    return %arg1, %c0_i32 : i32, i32
  }
  func.func @transform_3(%arg0: i32, %arg1: i32) -> (i32, i32) {
    %c0_i32 = arith.constant 0 : i32
    %c0_i32_0 = arith.constant 0 : i32
    %c0_i32_1 = arith.constant 0 : i32
    return %c0_i32, %c0_i32_0 : i32, i32
  }
  func.func @transform_4(%arg0: i32, %arg1: i32) -> (i32, i32, i32, i32) {
    %c0_i32 = arith.constant 0 : i32
    %c0_i32_0 = arith.constant 0 : i32
    %c0_i32_1 = arith.constant 0 : i32
    %c0_i32_2 = arith.constant 0 : i32
    return %arg0, %c0_i32, %c0_i32_0, %c0_i32_1 : i32, i32, i32, i32
  }
}

</mosaic_0001>

<bundles_post_ra>
// kernel: tpu_custom_call.1
= control target key start
LH: loop header
LB: loop body
LE: loop exit
PB: predicated region body
PF: predicated region fallthrough
CT: control target
= control target key end

     0   :  { %s1729_s15 = smov 0   ;;  %s1731_s16 = smov 0   ;;  %s2057_s0 = inlined_call_operand.vmem [shape: bf16[2,16,32,8], index: 0, kind: input, shape index: {}]   ;;  %s2058_s1 = inlined_call_operand.vmem [shape: bf16[85,512], index: 1, kind: input, shape index: {}]   ;;  %s2059_s2 = inlined_call_operand.vmem [shape: bf16[8,8], index: 2, kind: input, shape index: {}]   ;;  %s2060_s3 = inlined_call_operand.vmem [shape: f32[1,8], index: 3, kind: input, shape index: {}]   ;;  %s2061_s4 = inlined_call_operand.vmem [shape: bf16[2,4,64,2], index: 4, kind: output, shape index: {}]  }
   0x1   :  { %s1733_s17 = smov 0  }
   0x2 LB: > { %s26_s18 = sadd.s32 1, %s1693_s16  ;;  %p1342_p0 = scmp.ge.s32.totalorder %s1697_s17, 1  ;;  %s1697_s17 = sphi %s1733_s17, %s14_s17   ;;  %s1693_s16 = sphi %s1731_s16, %s2067_s16   ;;  %s1689_s15 = sphi %s1729_s15, %s2066_s15  }
   0x3   : > { %p28_p1 = scmp.ge.s32.totalorder %s26_s18, 2  ;;  %p188_p2 = scmp.lt.s32.totalorder %s1697_s17, 3 }
   0x5   : > { %s2069_s18 = smov (%p28_p1, %s26_s18), 0  ;;  %p189_p3 = pnand %p1342_p0, %p188_p2 }
   0x6   : > { %p221_p4 = scmp.lt.s32.totalorder (!%p189_p3), %s1689_s15, 1  ;;  %v1643_v0 = vld [vmem:[%s2058_s1 + $0x4] ss:$16 sps:$4 sm:$0xff] (!%p189_p3)   ;;  %v1646_v1 = vld [vmem:[%s2058_s1 + $0xc] ss:$16 sps:$4 sm:$0xff] (!%p189_p3)   ;;  %vm845_vm0 = vcmask (!%p189_p3), 1043456  }
   0x7   : > { %192 = sbr.rel (%p189_p3) target bundleno = 667 (0x29b), region = 36  ;;  %680 = vmatprep.mubr.bf16.mxu0 (!%p189_p3), %v1643_v0  ;;  %760 = vmatprep.mubr.bf16.mxu1 (!%p189_p3), %v1646_v1  ;;  %v1641_v32 = vld [vmem:[%s2058_s1] ss:$16 sps:$4 sm:$0xff] (!%p189_p3)   ;;  %v1644_v34 = vld [vmem:[%s2058_s1 + $0x8] ss:$16 sps:$4 sm:$0xff] (!%p189_p3)   ;;  %vm243_vm1 = vcmask (!%p189_p3), 64512  }
   0x8   : > { %v1647_v36 = vld [vmem:[%s2058_s1 + $0x24] ss:$16 sps:$4 sm:$0xff] (!%p189_p3)   ;;  %v1649_v37 = vld [vmem:[%s2058_s1 + $0x2c] ss:$16 sps:$4 sm:$0xff] (!%p189_p3)   ;;  %v1651_v38 = vld [vmem:[%s2058_s1 + $0x20] ss:$16 sps:$4 sm:$0xff] (!%p189_p3)  }
   0x9   : > { %v1652_v39 = vld [vmem:[%s2058_s1 + $0x28] ss:$16 sps:$4 sm:$0xff] (!%p189_p3)   ;;  %v1653_v40 = vld [vmem:[%s2058_s1 + $0x44] ss:$16 sps:$4 sm:$0xff] (!%p189_p3)   ;;  %v825_v41 = vld [vmem:[%s2059_s2] sm:$0xf] (!%p189_p3) }
   0xa   : > { %v1655_v42 = vld [vmem:[%s2058_s1 + $0x4c] ss:$16 sps:$4 sm:$0xff] (!%p189_p3)   ;;  %v847_v43 = vsel (!%p189_p3), %vm845_vm0, %v825_v41, 0  ;;  %v1657_v44 = vld [vmem:[%s2058_s1 + $0x40] ss:$16 sps:$4 sm:$0xff] (!%p189_p3)   ;;  %v1699_v60 = vmov (!%p189_p3), 0.0  }
   0xb   : > { %v1658_v45 = vld [vmem:[%s2058_s1 + $0x48] ss:$16 sps:$4 sm:$0xff] (!%p189_p3)   ;;  %v1659_v46 = vld [vmem:[%s2058_s1 + $0x64] ss:$16 sps:$4 sm:$0xff] (!%p189_p3)   ;;  %v1661_v47 = vld [vmem:[%s2058_s1 + $0x6c] ss:$16 sps:$4 sm:$0xff] (!%p189_p3)  }
   0xc   : > { %v1663_v48 = vld [vmem:[%s2058_s1 + $0x60] ss:$16 sps:$4 sm:$0xff] (!%p189_p3)   ;;  %v1664_v49 = vld [vmem:[%s2058_s1 + $0x68] ss:$16 sps:$4 sm:$0xff] (!%p189_p3)   ;;  %v1665_v50 = vld [vmem:[%s2058_s1 + $0x84] ss:$16 sps:$4 sm:$0xff] (!%p189_p3)  }
   0xd   : > { %v1667_v51 = vld [vmem:[%s2058_s1 + $0x8c] ss:$16 sps:$4 sm:$0xff] (!%p189_p3)   ;;  %v340_v52 = vld [vmem:[%s2058_s1 + $0xa0] sm:$0x77] (!%p189_p3)  ;;  %v1670_v55 = vld [vmem:[%s2058_s1 + $0x88] ss:$16 sps:$4 sm:$0xff] (!%p189_p3)  }
   0xe   : > { %s2071_s15 = smov (!%p221_p4, %s1689_s15), 1  ;;  %v341_v53 = vld [vmem:[%s2058_s1 + $0xa8] sm:$0x77]  ;;  %v1669_v54 = vld [vmem:[%s2058_s1 + $0x80] ss:$16 sps:$4 sm:$0xff]   ;;  %v1368_v56 = vcombine.high %v340_v52, %v340_v52  ;;  %v1367_v58 = vcombine.low %v340_v52, %v340_v52  ;;  %246 = vst.msk [vmem:[#allocation2 + $0x10] sm:$0xff] %vm243_vm1, %v1699_v60 }
   0xf   : > { %s1436_s23 = sshll.u32 %s2071_s15, 8  ;;  %v1370_v57 = vcombine.high %v341_v53, %v341_v53  ;;  %v1369_v59 = vcombine.low %v341_v53, %v341_v53  ;;  %244 = vst.msk [vmem:[#allocation2] sm:$0xff] %vm243_vm1, %v1699_v60  ;;  %245 = vst.msk [vmem:[#allocation2 + $0x8] sm:$0xff] %vm243_vm1, %v1699_v60  ;;  %s1437_s25 = sshll.u32 %s2071_s15, 7  ;;  %vm995_vm2 = vcmask 11264   ;;  %vm254_vm3 = vcmask 61440  }
  0x10   : > { %s1759_s26 = scalar_lea.vmem %s2057_s0, %s1436_s23  ;;  %247 = vst.msk [vmem:[#allocation2 + $0x18] sm:$0xff] %vm243_vm1, %v1699_v60  ;;  %248 = vst.msk [vmem:[#allocation2 + $0x20] sm:$0xff] %vm243_vm1, %v1699_v60  ;;  %s1886_s28 = scalar_lea.vmem %s2061_s4, %s1437_s25  ;;  %vm1029_vm4 = vcmask 8192   ;;  %vm1030_vm5 = vsmask.f32 256  ;;  %vm1051_vm10 = vcmask 9216  }
  0x11   : > { %v1609_v2 = vld [vmem:[%s1759_s26 + $0x40] sm:$0xff]   ;;  %v1613_v6 = vld [vmem:[%s1759_s26 + $0x48] sm:$0xff]   ;;  %v1617_v10 = vld [vmem:[%s1759_s26 + $0x50] sm:$0xff]   ;;  %249 = vst.msk [vmem:[#allocation2 + $0x28] sm:$0xff] %vm243_vm1, %v1699_v60  ;;  %vm1063_vm7 = vsmask.f32 1280 }
  0x12   : > { %v1610_v3 = vld [vmem:[%s1759_s26 + $0xc0] sm:$0xff]   ;;  %1451 = vmatprep.subr.bf16.mxu0 %v1609_v2  ;;  %v1614_v7 = vld [vmem:[%s1759_s26 + $0xc8] sm:$0xff]   ;;  %v1618_v11 = vld [vmem:[%s1759_s26 + $0xd0] sm:$0xff]   ;;  %250 = vst.msk [vmem:[#allocation2 + $0x30] sm:$0xff] %vm243_vm1, %v1699_v60  ;;  %vm1064_vm8 = vsmask.f32 5392 }
  0x13   : > { %v1611_v4 = vld [vmem:[%s1759_s26] sm:$0xff]   ;;  %1503 = vmatprep.subr.bf16.mxu1 %v1610_v3  ;;  %v1615_v8 = vld [vmem:[%s1759_s26 + $0x8] sm:$0xff]   ;;  %v1619_v12 = vld [vmem:[%s1759_s26 + $0x10] sm:$0xff]   ;;  %251 = vst.msk [vmem:[#allocation2 + $0x38] sm:$0xff] %vm243_vm1, %v1699_v60  ;;  %s1701_s30 = smov 126   ;;  %s1702_s5 = smov 122  }
  0x14   : > { %v1612_v5 = vld [vmem:[%s1759_s26 + $0x80] sm:$0xff]   ;;  %1452 = vmatpush3.bf16.msra.mxu0 %v1611_v4  ;;  %v1616_v9 = vld [vmem:[%s1759_s26 + $0x88] sm:$0xff]   ;;  %v1620_v13 = vld [vmem:[%s1759_s26 + $0x90] sm:$0xff]   ;;  %252 = vst.msk [vmem:[#allocation2 + $0x40] sm:$0xff] %vm243_vm1, %v1699_v60  ;;  %s1703_s6 = smov 124  }
  0x15   : > { %1504 = vmatpush3.bf16.msra.mxu1 %v1612_v5  ;;  %1453 = vmatprep.subr.bf16.mxu0 %v1613_v6  ;;  %v1621_v14 = vld [vmem:[%s1759_s26 + $0x58] sm:$0xff]   ;;  %v1625_v18 = vld [vmem:[%s1759_s26 + $0x60] sm:$0xff]   ;;  %v1629_v22 = vld [vmem:[%s1759_s26 + $0x68] sm:$0xff]   ;;  %253 = vst.msk [vmem:[#allocation2 + $0x48] sm:$0xff] %vm243_vm1, %v1699_v60 }
  0x16   : > { %1505 = vmatprep.subr.bf16.mxu1 %v1614_v7  ;;  %v1622_v15 = vld [vmem:[%s1759_s26 + $0xd8] sm:$0xff]   ;;  %v1626_v19 = vld [vmem:[%s1759_s26 + $0xe0] sm:$0xff]   ;;  %v1630_v23 = vld [vmem:[%s1759_s26 + $0xe8] sm:$0xff]   ;;  %255 = vst.msk [vmem:[#allocation2 + $0x50] sm:$0x1f] %vm254_vm3, %v1699_v60 }
  0x17   : > { %v1623_v16 = vld [vmem:[%s1759_s26 + $0x18] sm:$0xff]   ;;  %v1627_v20 = vld [vmem:[%s1759_s26 + $0x20] sm:$0xff]   ;;  %v1631_v24 = vld [vmem:[%s1759_s26 + $0x28] sm:$0xff]  }
  0x18   : > { %1454 = vmatpush3.bf16.msra.mxu0 %v1615_v8  ;;  %v1624_v17 = vld [vmem:[%s1759_s26 + $0x98] sm:$0xff]   ;;  %v1628_v21 = vld [vmem:[%s1759_s26 + $0xa0] sm:$0xff]   ;;  %v1632_v25 = vld [vmem:[%s1759_s26 + $0xa8] sm:$0xff]  }
  0x19   : > { %1506 = vmatpush3.bf16.msra.mxu1 %v1616_v9  ;;  %1455 = vmatprep.subr.bf16.mxu0 %v1617_v10  ;;  %v1633_v26 = vld [vmem:[%s1759_s26 + $0x70] sm:$0xff]   ;;  %v1637_v30 = vld [vmem:[%s1759_s26 + $0x78] sm:$0xff]   ;;  %v1961_v60 = vld [vmem:[%s2060_s3] ss:$0 sm:$0xff] }
  0x1a   : > { %1507 = vmatprep.subr.bf16.mxu1 %v1618_v11  ;;  %v1634_v27 = vld [vmem:[%s1759_s26 + $0xf0] sm:$0xff]   ;;  %v1638_v31 = vld [vmem:[%s1759_s26 + $0xf8] sm:$0xff]   ;;  %vm1967_vm6 = vmand %vm1029_vm4, %vm1030_vm5 }
  0x1b   : > { %v1635_v28 = vld [vmem:[%s1759_s26 + $0x30] sm:$0xff]   ;;  %v1639_v33 = vld [vmem:[%s1759_s26 + $0x38] sm:$0xff]   ;;  %vm1981_vm9 = vmor %vm1063_vm7, %vm1064_vm8 }
  0x1c   : > { %1456 = vmatpush3.bf16.msra.mxu0 %v1619_v12  ;;  %v1636_v29 = vld [vmem:[%s1759_s26 + $0xb0] sm:$0xff]   ;;  %v1640_v35 = vld [vmem:[%s1759_s26 + $0xb8] sm:$0xff]  }
  0x1d   : > { %1508 = vmatpush3.bf16.msra.mxu1 %v1620_v13  ;;  %1457 = vmatprep.subr.bf16.mxu0 %v1621_v14 }
  0x1e   : > { %1509 = vmatprep.subr.bf16.mxu1 %v1622_v15 }
  0x20   : > { %1458 = vmatpush3.bf16.msra.mxu0 %v1623_v16 }
  0x21   : > { %1510 = vmatpush3.bf16.msra.mxu1 %v1624_v17  ;;  %1459 = vmatprep.subr.bf16.mxu0 %v1625_v18 }
  0x22   : > { %1511 = vmatprep.subr.bf16.mxu1 %v1626_v19 }
  0x24   : > { %1460 = vmatpush3.bf16.msra.mxu0 %v1627_v20 }
  0x25   : > { %1512 = vmatpush3.bf16.msra.mxu1 %v1628_v21  ;;  %1461 = vmatprep.subr.bf16.mxu0 %v1629_v22 }
  0x26   : > { %1513 = vmatprep.subr.bf16.mxu1 %v1630_v23 }
  0x28   : > { %1462 = vmatpush3.bf16.msra.mxu0 %v1631_v24 }
  0x29   : > { %1514 = vmatpush3.bf16.msra.mxu1 %v1632_v25  ;;  %1463 = vmatprep.subr.bf16.mxu0 %v1633_v26 }
  0x2a   : > { %1515 = vmatprep.subr.bf16.mxu1 %v1634_v27 }
  0x2c   : > { %1464 = vmatpush3.bf16.msra.mxu0 %v1635_v28 }
  0x2d   : > { %1516 = vmatpush3.bf16.msra.mxu1 %v1636_v29  ;;  %1465 = vmatprep.subr.bf16.mxu0 %v1637_v30 }
  0x2e   : > { %1517 = vmatprep.subr.bf16.mxu1 %v1638_v31 }
  0x30   : > { %1466 = vmatpush3.bf16.msra.mxu0 %v1639_v33 }
  0x31   : > { %1518 = vmatpush3.bf16.msra.mxu1 %v1640_v35  ;;  %1578 = vmatprep.subr.msk.bf16.mxu0 %vm845_vm0, %v825_v41 }
  0x32   : > { %1579 = vmatprep.subr.msk.bf16.mxu1 %vm845_vm0, %v825_v41 }
  0x33   : > { %681 = vmatmul.mubr.bf16.vlgmr.msra.gmra.mrb[0].mxu0 %v1641_v32 }
  0x34   : > { %761 = vmatmul.mubr.bf16.vlgmr.msra.gmra.mrb[0].mxu1 %v1644_v34  ;;  %688 = vmatprep.mubr.bf16.mxu0 %v1647_v36 }
  0x35   : > { %768 = vmatprep.mubr.bf16.mxu1 %v1649_v37  ;;  %1563 = vmatpush3.bf16.msra.mxu0 %v847_v43 }
  0x36   : > { %1577 = vmatpush3.bf16.msra.mxu1 %v847_v43 }
  0x3b   : > { %689 = vmatmul.mubr.bf16.gmra.mrb[4].mxu0 %v1651_v38 }
  0x3c   : > { %769 = vmatmul.mubr.bf16.gmra.mrb[4].mxu1 %v1652_v39  ;;  %696 = vmatprep.mubr.bf16.mxu0 %v1653_v40 }
  0x3d   : > { %776 = vmatprep.mubr.bf16.mxu1 %v1655_v42 }
  0x43   : > { %697 = vmatmul.mubr.bf16.gmra.mrb[8].mxu0 %v1657_v44 }
  0x44   : > { %777 = vmatmul.mubr.bf16.gmra.mrb[8].mxu1 %v1658_v45  ;;  %704 = vmatprep.mubr.bf16.mxu0 %v1659_v46 }
  0x45   : > { %784 = vmatprep.mubr.bf16.mxu1 %v1661_v47 }
  0x4b   : > { %705 = vmatmul.mubr.bf16.gmra.mrb[12].mxu0 %v1663_v48 }
  0x4c   : > { %785 = vmatmul.mubr.bf16.gmra.mrb[12].mxu1 %v1664_v49  ;;  %712 = vmatprep.mubr.bf16.mxu0 %v1665_v50 }
  0x4d   : > { %792 = vmatprep.mubr.bf16.mxu1 %v1667_v51 }
  0x53   : > { %713 = vmatmul.mubr.bf16.gmra.mrb[16].mxu0 %v1669_v54 }
  0x54   : > { %793 = vmatmul.mubr.bf16.gmra.mrb[16].mxu1 %v1670_v55  ;;  %720 = vmatprep.mubr.bf16.mxu0 %v1368_v56 }
  0x55   : > { %800 = vmatprep.mubr.bf16.mxu1 %v1370_v57 }
  0x5b   : > { %721 = vmatmul.mubr.bf16.gmra.mrb[20].mxu0 %v1367_v58 }
  0x5c   : > { %801 = vmatmul.mubr.bf16.gmra.mrb[20].mxu1 %v1369_v59 }
 0x106   : > { %v1467_v61 = vpop.f32.mrb[0].mxu0 }
 0x107   : > { %v1519_v62 = vpop.f32.mrb[0].mxu1  ;;  %v1468_v63 = vpop.f32.mrb[1].mxu0 }
 0x108   : > { %v1469_v0 = vadd.f32 %v1468_v63, %v1467_v61  ;;  %v1520_v1 = vpop.f32.mrb[1].mxu1  ;;  %v1470_v2 = vpop.f32.mrb[2].mxu0 }
 0x109   : > { %v1521_v3 = vadd.f32 %v1520_v1, %v1519_v62  ;;  %v1522_v4 = vpop.f32.mrb[2].mxu1  ;;  %v1471_v5 = vpop.f32.mrb[3].mxu0 }
 0x10a   : > { %v1472_v6 = vadd.f32 %v1471_v5, %v1470_v2  ;;  %v1523_v7 = vpop.f32.mrb[3].mxu1 }
 0x10b   : > { %v763_v8 = vadd.f32 %v1521_v3, %v1469_v0  ;;  %v1524_v9 = vadd.f32 %v1523_v7, %v1522_v4 }
 0x10d   : > { %v766_v10 = vadd.f32 %v1524_v9, %v1472_v6 }
 0x10e   : > { %v1473_v11 = vpop.f32.mrb[4].mxu0 }
 0x10f   : > { %v819_v12 = vpack.c.bf16 %v766_v10, %v763_v8  ;;  %v1525_v13 = vpop.f32.mrb[4].mxu1  ;;  %v1474_v14 = vpop.f32.mrb[5].mxu0 }
 0x110   : > { %v1475_v15 = vadd.f32 %v1474_v14, %v1473_v11  ;;  %v1526_v16 = vpop.f32.mrb[5].mxu1  ;;  %v1476_v17 = vpop.f32.mrb[6].mxu0 }
 0x111   : > { %v1527_v18 = vadd.f32 %v1526_v16, %v1525_v13  ;;  %v1528_v19 = vpop.f32.mrb[6].mxu1  ;;  %1564 = vmatprep.mubr.msk.bf16.mxu0 %vm243_vm1, %v819_v12  ;;  %v1477_v20 = vpop.f32.mrb[7].mxu0 }
 0x112   : > { %v1478_v21 = vadd.f32 %v1477_v20, %v1476_v17  ;;  %v1529_v22 = vpop.f32.mrb[7].mxu1 }
 0x113   : > { %v771_v23 = vadd.f32 %v1527_v18, %v1475_v15  ;;  %v1530_v24 = vadd.f32 %v1529_v22, %v1528_v19  ;;  %v810_v22 = vld [vmem:[#allocation2 + $0x10] sm:$0xff] }
 0x115   : > { %v774_v25 = vadd.f32 %v1530_v24, %v1478_v21  ;;  %v1700_v21 = vmov 0  }
 0x116   : > { %v1479_v26 = vpop.f32.mrb[8].mxu0  ;;  %996 = vst.msk [vmem:[%s1886_s28] sm:$0xf] %vm995_vm2, %v1700_v21  ;;  %997 = vst.msk [vmem:[%s1886_s28 + $0x4] sm:$0xf] %vm995_vm2, %v1700_v21 }
 0x117   : > { %v820_v27 = vpack.c.bf16 %v774_v25, %v771_v23  ;;  %v1531_v28 = vpop.f32.mrb[8].mxu1  ;;  %v1480_v29 = vpop.f32.mrb[9].mxu0  ;;  %998 = vst.msk [vmem:[%s1886_s28 + $0x8] sm:$0xf] %vm995_vm2, %v1700_v21  ;;  %999 = vst.msk [vmem:[%s1886_s28 + $0xc] sm:$0xf] %vm995_vm2, %v1700_v21 }
 0x118   : > { %v1481_v30 = vadd.f32 %v1480_v29, %v1479_v26  ;;  %v1532_v31 = vpop.f32.mrb[9].mxu1  ;;  %v1482_v32 = vpop.f32.mrb[10].mxu0  ;;  %1000 = vst.msk [vmem:[%s1886_s28 + $0x10] sm:$0xf] %vm995_vm2, %v1700_v21  ;;  %1001 = vst.msk [vmem:[%s1886_s28 + $0x14] sm:$0xf] %vm995_vm2, %v1700_v21 }
 0x119   : > { %v1533_v33 = vadd.f32 %v1532_v31, %v1531_v28  ;;  %v1534_v34 = vpop.f32.mrb[10].mxu1  ;;  %1565 = vmatmul.mubr.msk.bf16.vlgmr.msra.gmra.mrb[24].mxu0 %vm243_vm1, %v820_v27  ;;  %v1483_v35 = vpop.f32.mrb[11].mxu0  ;;  %1002 = vst.msk [vmem:[%s1886_s28 + $0x18] sm:$0xf] %vm995_vm2, %v1700_v21  ;;  %1003 = vst.msk [vmem:[%s1886_s28 + $0x1c] sm:$0xf] %vm995_vm2, %v1700_v21 }
 0x11a   : > { %v1484_v36 = vadd.f32 %v1483_v35, %v1482_v32  ;;  %v1535_v37 = vpop.f32.mrb[11].mxu1  ;;  %1005 = vst.msk [vmem:[%s1886_s28 + $0x24] sm:$0xf] %vm995_vm2, %v1700_v21  ;;  %1006 = vst.msk [vmem:[%s1886_s28 + $0x28] sm:$0xf] %vm995_vm2, %v1700_v21  ;;  %v808_v23 = vld [vmem:[#allocation2] sm:$0xff] }
 0x11b   : > { %v779_v38 = vadd.f32 %v1533_v33, %v1481_v30  ;;  %v1536_v39 = vadd.f32 %v1535_v37, %v1534_v34  ;;  %1007 = vst.msk [vmem:[%s1886_s28 + $0x2c] sm:$0xf] %vm995_vm2, %v1700_v21  ;;  %1008 = vst.msk [vmem:[%s1886_s28 + $0x30] sm:$0xf] %vm995_vm2, %v1700_v21  ;;  %v811_v25 = vld [vmem:[#allocation2 + $0x18] sm:$0xff]  ;;  %v809_v28 = vld [vmem:[#allocation2 + $0x8] sm:$0xff] }
 0x11c   : > { %1009 = vst.msk [vmem:[%s1886_s28 + $0x34] sm:$0xf] %vm995_vm2, %v1700_v21  ;;  %1010 = vst.msk [vmem:[%s1886_s28 + $0x38] sm:$0xf] %vm995_vm2, %v1700_v21 }
 0x11d   : > { %v782_v40 = vadd.f32 %v1536_v39, %v1484_v36  ;;  %1011 = vst.msk [vmem:[%s1886_s28 + $0x3c] sm:$0xf] %vm995_vm2, %v1700_v21  ;;  %1014 = vst.msk [vmem:[%s1886_s28 + $0x48] sm:$0xf] %vm995_vm2, %v1700_v21 }
 0x11e   : > { %v1485_v41 = vpop.f32.mrb[12].mxu0  ;;  %1015 = vst.msk [vmem:[%s1886_s28 + $0x4c] sm:$0xf] %vm995_vm2, %v1700_v21  ;;  %1016 = vst.msk [vmem:[%s1886_s28 + $0x50] sm:$0xf] %vm995_vm2, %v1700_v21 }
 0x11f   : > { %v821_v42 = vpack.c.bf16 %v782_v40, %v779_v38  ;;  %v1537_v43 = vpop.f32.mrb[12].mxu1  ;;  %v1486_v44 = vpop.f32.mrb[13].mxu0  ;;  %1017 = vst.msk [vmem:[%s1886_s28 + $0x54] sm:$0xf] %vm995_vm2, %v1700_v21  ;;  %1018 = vst.msk [vmem:[%s1886_s28 + $0x58] sm:$0xf] %vm995_vm2, %v1700_v21 }
 0x120   : > { %v1487_v45 = vadd.f32 %v1486_v44, %v1485_v41  ;;  %v1538_v46 = vpop.f32.mrb[13].mxu1  ;;  %v1488_v47 = vpop.f32.mrb[14].mxu0  ;;  %1019 = vst.msk [vmem:[%s1886_s28 + $0x5c] sm:$0xf] %vm995_vm2, %v1700_v21  ;;  %1004 = vst.msk [vmem:[%s1886_s28 + $0x20] sm:$0xf] %vm995_vm2, %v1700_v21 }
 0x121   : > { %v1539_v48 = vadd.f32 %v1538_v46, %v1537_v43  ;;  %v1540_v49 = vpop.f32.mrb[14].mxu1  ;;  %1568 = vmatprep.mubr.msk.bf16.mxu1 %vm243_vm1, %v821_v42  ;;  %v1489_v50 = vpop.f32.mrb[15].mxu0  ;;  %1012 = vst.msk [vmem:[%s1886_s28 + $0x40] sm:$0xf] %vm995_vm2, %v1700_v21  ;;  %1013 = vst.msk [vmem:[%s1886_s28 + $0x44] sm:$0xf] %vm995_vm2, %v1700_v21 }
 0x122   : > { %v1490_v51 = vadd.f32 %v1489_v50, %v1488_v47  ;;  %v1541_v52 = vpop.f32.mrb[15].mxu1  ;;  %1020 = vst.msk [vmem:[%s1886_s28 + $0x60] sm:$0xf] %vm995_vm2, %v1700_v21  ;;  %1021 = vst.msk [vmem:[%s1886_s28 + $0x64] sm:$0xf] %vm995_vm2, %v1700_v21  ;;  %v814_v42 = vld [vmem:[#allocation2 + $0x30] sm:$0xff] }
 0x123   : > { %v787_v53 = vadd.f32 %v1539_v48, %v1487_v45  ;;  %v1542_v54 = vadd.f32 %v1541_v52, %v1540_v49  ;;  %1022 = vst.msk [vmem:[%s1886_s28 + $0x68] sm:$0xf] %vm995_vm2, %v1700_v21  ;;  %1023 = vst.msk [vmem:[%s1886_s28 + $0x6c] sm:$0xf] %vm995_vm2, %v1700_v21  ;;  %v812_v43 = vld [vmem:[#allocation2 + $0x20] sm:$0xff]  ;;  %v815_v46 = vld [vmem:[#allocation2 + $0x38] sm:$0xff] }
 0x124   : > { %1024 = vst.msk [vmem:[%s1886_s28 + $0x70] sm:$0xf] %vm995_vm2, %v1700_v21  ;;  %1025 = vst.msk [vmem:[%s1886_s28 + $0x74] sm:$0xf] %vm995_vm2, %v1700_v21  ;;  %v1032_v48 = vld [vmem:[%s1886_s28] sm:$0x1] }
 0x125   : > { %v790_v55 = vadd.f32 %v1542_v54, %v1490_v51  ;;  %1026 = vst.msk [vmem:[%s1886_s28 + $0x78] sm:$0xf] %vm995_vm2, %v1700_v21  ;;  %1027 = vst.msk [vmem:[%s1886_s28 + $0x7c] sm:$0xf] %vm995_vm2, %v1700_v21  ;;  %v817_v47 = vld [vmem:[#allocation2 + $0x48] sm:$0xff] }
 0x126   : > { %v1491_v56 = vpop.f32.mrb[16].mxu0 }
 0x127   : > { %v822_v57 = vpack.c.bf16 %v790_v55, %v787_v53  ;;  %v1543_v58 = vpop.f32.mrb[16].mxu1  ;;  %v1492_v59 = vpop.f32.mrb[17].mxu0 }
 0x128   : > { %v1493_v61 = vadd.f32 %v1492_v59, %v1491_v56  ;;  %v1544_v62 = vpop.f32.mrb[17].mxu1  ;;  %v1494_v63 = vpop.f32.mrb[18].mxu0  ;;  %v813_v56 = vld [vmem:[#allocation2 + $0x28] sm:$0xff] }
 0x129   : > { %v1545_v0 = vadd.f32 %v1544_v62, %v1543_v58  ;;  %v1546_v1 = vpop.f32.mrb[18].mxu1  ;;  %1569 = vmatmul.mubr.msk.bf16.vlgmr.msra.gmra.mrb[24].mxu1 %vm243_vm1, %v822_v57  ;;  %v1495_v2 = vpop.f32.mrb[19].mxu0 }
 0x12a   : > { %v1496_v3 = vadd.f32 %v1495_v2, %v1494_v63  ;;  %v1547_v4 = vpop.f32.mrb[19].mxu1 }
 0x12b   : > { %v795_v5 = vadd.f32 %v1545_v0, %v1493_v61  ;;  %v1548_v6 = vadd.f32 %v1547_v4, %v1546_v1 }
 0x12d   : > { %v798_v7 = vadd.f32 %v1548_v6, %v1496_v3 }
 0x12e   : > { %v1497_v8 = vpop.f32.mrb[20].mxu0 }
 0x12f   : > { %v823_v9 = vpack.c.bf16 %v798_v7, %v795_v5  ;;  %v1549_v10 = vpop.f32.mrb[20].mxu1  ;;  %v1498_v11 = vpop.f32.mrb[21].mxu0 }
 0x130   : > { %v1499_v12 = vadd.f32 %v1498_v11, %v1497_v8  ;;  %v1550_v13 = vpop.f32.mrb[21].mxu1  ;;  %v1500_v14 = vpop.f32.mrb[22].mxu0 }
 0x131   : > { %v1551_v15 = vadd.f32 %v1550_v13, %v1549_v10  ;;  %v1552_v16 = vpop.f32.mrb[22].mxu1  ;;  %1572 = vmatprep.mubr.msk.bf16.mxu1 %vm243_vm1, %v823_v9  ;;  %v1501_v17 = vpop.f32.mrb[23].mxu0 }
 0x132   : > { %v1553_v18 = vpop.f32.mrb[23].mxu1 }
 0x133   : > { %v803_v19 = vadd.f32 %v1551_v15, %v1499_v12 }
 0x135   : > { %v824_v20 = vpack.c.bf16 %v803_v19, %v803_v19 }
 0x137   : > { %1573 = vmatmul.mubr.msk.bf16.gmra.mrb[28].mxu1 %vm243_vm1, %v824_v20 }
 0x1ec   : > { %v1566_v24 = vpop.f32.mrb[24].mxu0 }
 0x1ed   : > { %v931_v26 = vadd.f32 %v1566_v24, %v810_v22  ;;  %v883_v27 = vpop.f32.mrb[25].mxu0 }
 0x1ee   : > { %v929_v29 = vadd.f32 %v883_v27, %v808_v23  ;;  %v1567_v30 = vpop.f32.mrb[26].mxu0 }
 0x1ef   : > { %942 = vst.msk [vmem:[#allocation2 + $0x10] sm:$0xff] %vm243_vm1, %v931_v26  ;;  %v932_v31 = vadd.f32 %v1567_v30, %v811_v25  ;;  %v886_v32 = vpop.f32.mrb[27].mxu0 }
 0x1f0   : > { %940 = vst.msk [vmem:[#allocation2] sm:$0xff] %vm243_vm1, %v929_v29  ;;  %v930_v33 = vadd.f32 %v886_v32, %v809_v28  ;;  %v818_v32 = vld [vmem:[#allocation2 + $0x50] sm:$0x1f] }
 0x1f1   : > { %943 = vst.msk [vmem:[#allocation2 + $0x18] sm:$0xff] %vm243_vm1, %v932_v31 }
 0x1f2   : > { %941 = vst.msk [vmem:[#allocation2 + $0x8] sm:$0xff] %vm243_vm1, %v930_v33 }
 0x1f6   : > { %v957_v34 = vld [vmem:[#allocation2 + $0x10] sm:$0xff] }
 0x1f7   : > { %v955_v35 = vld [vmem:[#allocation2] sm:$0xff]  ;;  %v975_v36 = vadd.f32 %v1961_v60, %v957_v34 }
 0x1f8   : > { %v973_v37 = vadd.f32 %v1961_v60, %v955_v35  ;;  %v958_v38 = vld [vmem:[#allocation2 + $0x18] sm:$0xff] }
 0x1f9   : > { %v976_v39 = vadd.f32 %v1961_v60, %v958_v38  ;;  %v986_v40 = vmax.f32 %v975_v36, 0.0  ;;  %v956_v41 = vld [vmem:[#allocation2 + $0x8] sm:$0xff]  ;;  %v816_v36 = vld [vmem:[#allocation2 + $0x40] sm:$0xff] }
 0x1fa   : > { %v984_v44 = vmax.f32 %v973_v37, 0.0  ;;  %v974_v45 = vadd.f32 %v1961_v60, %v956_v41 }
 0x1fb   : > { %v987_v49 = vmax.f32 %v976_v39, 0.0  ;;  %v1441_v50 = vpack.c.bf16 %v986_v40, %v986_v40 }
 0x1fc   : > { %v1570_v51 = vpop.f32.mrb[24].mxu1  ;;  %v1028_v52 = vpack.c.bf16 %v984_v44, %v984_v44  ;;  %v985_v53 = vmax.f32 %v974_v45, 0.0 }
 0x1fd   : > { %v935_v54 = vadd.f32 %v1570_v51, %v814_v42  ;;  %v899_v55 = vpop.f32.mrb[25].mxu1  ;;  %v1086_v57 = vshrl.u32 %v1441_v50, 16  ;;  %v1089_v58 = vshll.u32 %v1441_v50, 16  ;;  %v1443_v59 = vpack.c.bf16 %v987_v49, %v987_v49 }
 0x1fe   : > { %v933_v61 = vadd.f32 %v899_v55, %v812_v43  ;;  %v1571_v62 = vpop.f32.mrb[26].mxu1  ;;  %v1039_v63 = vshrl.u32 %v1028_v52, 16  ;;  %v1042_v0 = vshll.u32 %v1028_v52, 16  ;;  %v1033_v1 = vsel %vm1967_vm6, %v1028_v52, %v1032_v48 }
 0x1ff   : > { %946 = vst.msk [vmem:[#allocation2 + $0x30] sm:$0xff] %vm243_vm1, %v935_v54  ;;  %v936_v2 = vadd.f32 %v1571_v62, %v815_v46  ;;  %v902_v3 = vpop.f32.mrb[27].mxu1  ;;  %1034 = vst [vmem:[%s1886_s28] sm:$0x1] %v1033_v1  ;;  %v1088_v4 = vrot.slane %v1086_v57, 6  ;;  %v1091_v5 = vrot.slane %v1089_v58, 7  ;;  %v1141_v6 = vshrl.u32 %v1443_v59, 16 }
 0x200   : > { %944 = vst.msk [vmem:[#allocation2 + $0x20] sm:$0xff] %vm243_vm1, %v933_v61  ;;  %v934_v7 = vadd.f32 %v902_v3, %v813_v56  ;;  %v1041_v8 = vrot.slane %v1039_v63, 4  ;;  %v1044_v9 = vrot.slane %v1042_v0, 5  ;;  %v1069_v10 = vrot.slane %v1039_v63, 6 }
 0x201   : > { %947 = vst.msk [vmem:[#allocation2 + $0x38] sm:$0xff] %vm243_vm1, %v936_v2  ;;  %v1072_v11 = vrot.slane %v1042_v0, 7  ;;  %v1092_v12 = vor.u32 %v1091_v5, %v1088_v4  ;;  %v1143_v13 = vrot.slane %v1141_v6, 6  ;;  %v1144_v14 = vshll.u32 %v1443_v59, 16 }
 0x202   : > { %945 = vst.msk [vmem:[#allocation2 + $0x28] sm:$0xff] %vm243_vm1, %v934_v7  ;;  %v1045_v15 = vor.u32 %v1044_v9, %v1041_v8  ;;  %v1440_v16 = vpack.c.bf16 %v985_v53, %v985_v53 }
 0x203   : > { %v1139_v17 = vrot.slane %v1092_v12, 4  ;;  %v1146_v18 = vrot.slane %v1144_v14, 7  ;;  %v1073_v19 = vor.u32 %v1072_v11, %v1069_v10 }
 0x204   : > { %v1046_v20 = vrot.slane %v1045_v15, 4  ;;  %v1076_v22 = vshrl.u32 %v1440_v16, 16  ;;  %v1079_v23 = vshll.u32 %v1440_v16, 16 }
 0x205   : > { %v1985_v24 = vor.u32 %v1146_v18, %v1143_v13  ;;  %v1074_v27 = vrot.slane %v1073_v19, 4 }
 0x206   : > { %1047 = vrot.lane.b32.xlu0 %v1046_v20, %s1701_s30  ;;  %v1078_v25 = vrot.slane %v1076_v22, 6  ;;  %v1081_v26 = vrot.slane %v1079_v23, 7  ;;  %v961_v28 = vld [vmem:[#allocation2 + $0x30] sm:$0xff] }
 0x207   : > { %v1148_v29 = vsel %vm1981_vm9, %v1139_v17, %v1985_v24  ;;  %v959_v30 = vld [vmem:[#allocation2 + $0x20] sm:$0xff]  ;;  %v979_v31 = vadd.f32 %v1961_v60, %v961_v28  ;;  %v1149_v11 = vrot.slane %v1985_v24, 4 }
 0x208   : > { %1219 = vrot.lane.b32.xlu1 %v1148_v29, %s1702_s5  ;;  %v1082_v33 = vor.u32 %v1081_v26, %v1078_v25  ;;  %v977_v34 = vadd.f32 %v1961_v60, %v959_v30  ;;  %v962_v35 = vld [vmem:[#allocation2 + $0x38] sm:$0xff] }
 0x209   : > { %v980_v37 = vadd.f32 %v1961_v60, %v962_v35  ;;  %v990_v38 = vmax.f32 %v979_v31, 0.0  ;;  %v960_v39 = vld [vmem:[#allocation2 + $0x28] sm:$0xff] }
 0x20a   : > { %v1574_v40 = vpop.f32.mrb[28].mxu1  ;;  %v1084_v41 = vrot.slane %v1082_v33, 4  ;;  %v1083_v42 = vsel %vm1981_vm9, %v1074_v27, %v1082_v33  ;;  %v988_v43 = vmax.f32 %v977_v34, 0.0  ;;  %v978_v44 = vadd.f32 %v1961_v60, %v960_v39 }
 0x20b   : > { %v939_v45 = vadd.f32 %v1574_v40, %v818_v32  ;;  %1094 = vrot.lane.b32.xlu0 %v1083_v42, %s1703_s6  ;;  %v915_v46 = vpop.f32.mrb[29].mxu1  ;;  %v991_v48 = vmax.f32 %v980_v37, 0.0  ;;  %v1446_v49 = vpack.c.bf16 %v990_v38, %v990_v38 }
 0x20c   : > { %v1093_v50 = vsel %vm1981_vm9, %v1084_v41, %v1092_v12  ;;  %v937_v51 = vadd.f32 %v915_v46, %v816_v36  ;;  %v1575_v52 = vpop.f32.mrb[30].mxu1  ;;  %v1444_v53 = vpack.c.bf16 %v988_v43, %v988_v43  ;;  %v989_v54 = vmax.f32 %v978_v44, 0.0 }
 0x20d   : > { %951 = vst.msk [vmem:[#allocation2 + $0x50] sm:$0x1f] %vm254_vm3, %v939_v45  ;;  %1096 = vrot.lane.b32.xlu1 %v1093_v50, %s1703_s6  ;;  %v918_v55 = vpop.f32.mrb[31].mxu1  ;;  %v1447_v56 = vpack.c.bf16 %v991_v48, %v991_v48  ;;  %v1171_v57 = vshrl.u32 %v1446_v49, 16  ;;  %v1174_v58 = vshll.u32 %v1446_v49, 16 }
 0x20e   : > { %948 = vst.msk [vmem:[#allocation2 + $0x40] sm:$0xff] %vm243_vm1, %v937_v51  ;;  %v938_v59 = vadd.f32 %v918_v55, %v817_v47  ;;  %v1151_v61 = vshrl.u32 %v1444_v53, 16  ;;  %v1154_v62 = vshll.u32 %v1444_v53, 16  ;;  %v1445_v63 = vpack.c.bf16 %v989_v54, %v989_v54 }
 0x20f   : > { %v1173_v0 = vrot.slane %v1171_v57, 6  ;;  %v1176_v1 = vrot.slane %v1174_v58, 7  ;;  %v1181_v2 = vshrl.u32 %v1447_v56, 16  ;;  %v1184_v3 = vshll.u32 %v1447_v56, 16 }
 0x210   : > { %949 = vst.msk [vmem:[#allocation2 + $0x48] sm:$0xff] %vm243_vm1, %v938_v59  ;;  %v1153_v4 = vrot.slane %v1151_v61, 6  ;;  %v1156_v5 = vrot.slane %v1154_v62, 7  ;;  %v1161_v6 = vshrl.u32 %v1445_v63, 16  ;;  %v1164_v7 = vshll.u32 %v1445_v63, 16 }
 0x211   : > { %v1177_v8 = vor.u32 %v1176_v1, %v1173_v0  ;;  %v1183_v9 = vrot.slane %v1181_v2, 6  ;;  %v1186_v10 = vrot.slane %v1184_v3, 7 }
 0x212   : > { %v1157_v12 = vor.u32 %v1156_v5, %v1153_v4  ;;  %v1163_v13 = vrot.slane %v1161_v6, 6  ;;  %v1166_v14 = vrot.slane %v1164_v7, 7 }
 0x213   : > { %v1179_v15 = vrot.slane %v1177_v8, 4  ;;  %v1187_v16 = vor.u32 %v1186_v10, %v1183_v9 }
 0x214   : > { %v1158_v17 = vsel %vm1981_vm9, %v1149_v11, %v1157_v12  ;;  %v1167_v18 = vor.u32 %v1166_v14, %v1163_v13  ;;  %v965_v19 = vld [vmem:[#allocation2 + $0x50] sm:$0x1f]  ;;  %v1159_v22 = vrot.slane %v1157_v12, 4 }
 0x215   : > { %1221 = vrot.lane.b32.xlu0 %v1158_v17, %s1702_s5  ;;  %v1188_v20 = vsel %vm1981_vm9, %v1179_v15, %v1187_v16  ;;  %v963_v23 = vld [vmem:[#allocation2 + $0x40] sm:$0xff]  ;;  %v983_v25 = vadd.f32 %v1961_v60, %v965_v19 }
 0x216   : > { %1227 = vrot.lane.b32.xlu1 %v1188_v20, %s1702_s5  ;;  %v1169_v24 = vrot.slane %v1167_v18, 4  ;;  %v981_v26 = vadd.f32 %v1961_v60, %v963_v23  ;;  %v1168_v32 = vsel %vm1981_vm9, %v1159_v22, %v1167_v18 }
 0x217   : > { %v964_v27 = vld [vmem:[#allocation2 + $0x48] sm:$0xff]  ;;  %v994_v28 = vmax.f32 %v983_v25, 0.0 }
 0x218   : > { %v1178_v29 = vsel %vm1981_vm9, %v1169_v24, %v1177_v8  ;;  %v992_v30 = vmax.f32 %v981_v26, 0.0  ;;  %v982_v31 = vadd.f32 %v1961_v60, %v964_v27  ;;  %v1189_v60 = vrot.slane %v1187_v16, 4 }
 0x219   : > { %1225 = vrot.lane.b32.xlu0 %v1178_v29, %s1702_s5  ;;  %v1450_v33 = vpack.c.bf16 %v994_v28, %v994_v28 }
 0x21a   : > { %1223 = vrot.lane.b32.xlu1 %v1168_v32, %s1702_s5  ;;  %v1448_v34 = vpack.c.bf16 %v992_v30, %v992_v30  ;;  %v993_v35 = vmax.f32 %v982_v31, 0.0 }
 0x21b   : > { %v1211_v36 = vshrl.u32 %v1450_v33, 16  ;;  %v1214_v40 = vshll.u32 %v1450_v33, 16 }
 0x21c   : > { %v1191_v37 = vshrl.u32 %v1448_v34, 16  ;;  %v1194_v38 = vshll.u32 %v1448_v34, 16  ;;  %v1449_v39 = vpack.c.bf16 %v993_v35, %v993_v35 }
 0x21d   : > { %v1213_v45 = vrot.slane %v1211_v36, 6  ;;  %v1216_v49 = vrot.slane %v1214_v40, 7 }
 0x21e   : > { %v1193_v41 = vrot.slane %v1191_v37, 6  ;;  %v1196_v42 = vrot.slane %v1194_v38, 7  ;;  %v1201_v43 = vshrl.u32 %v1449_v39, 16  ;;  %v1204_v44 = vshll.u32 %v1449_v39, 16 }
 0x21f   : > { %v1217_v55 = vor.u32 %v1216_v49, %v1213_v45 }
 0x220   : > { %v1197_v46 = vor.u32 %v1196_v42, %v1193_v41  ;;  %v1203_v47 = vrot.slane %v1201_v43, 6  ;;  %v1206_v48 = vrot.slane %v1204_v44, 7 }
 0x222   : > { %v1198_v50 = vsel %vm1981_vm9, %v1189_v60, %v1197_v46  ;;  %v1199_v51 = vrot.slane %v1197_v46, 4  ;;  %v1207_v52 = vor.u32 %v1206_v48, %v1203_v47 }
 0x223   : > { %1229 = vrot.lane.b32.xlu0 %v1198_v50, %s1702_s5 }
 0x224   : > { %v1208_v53 = vsel %vm1981_vm9, %v1199_v51, %v1207_v52  ;;  %v1209_v54 = vrot.slane %v1207_v52, 4 }
 0x225   : > { %1231 = vrot.lane.b32.xlu1 %v1208_v53, %s1702_s5 }
 0x226   : > { %v1218_v56 = vsel %vm1981_vm9, %v1209_v54, %v1217_v55 }
 0x227   : > { %1233 = vrot.lane.b32.xlu0 %v1218_v56, %s1702_s5 }
 0x278   : > { %v1048_v57 = vpop.permute.xlu0 %1047 }
 0x279   : > { %1411 = vst.msk [vmem:[%s1886_s28 + $0x20] sm:$0x3] %vm1051_vm10, %v1048_v57 }
 0x27a   : > { %v1220_v58 = vpop.permute.xlu1 %1219 }
 0x27b   : > { %1426 = vst.msk [vmem:[%s1886_s28 + $0x60] sm:$0xf] %vm995_vm2, %v1220_v58 }
 0x27d   : > { %v1095_v59 = vpop.permute.xlu0 %1094 }
 0x27e   : > { %1415 = vst.msk [vmem:[%s1886_s28 + $0x40] sm:$0xf] %vm995_vm2, %v1095_v59 }
 0x27f   : > { %v1097_v61 = vpop.permute.xlu1 %1096 }
 0x280   : > { %1416 = vst.msk [vmem:[%s1886_s28 + $0x44] sm:$0xf] %vm995_vm2, %v1097_v61 }
 0x287   : > { %v1222_v21 = vpop.permute.xlu0 %1221 }
 0x288   : > { %1427 = vst.msk [vmem:[%s1886_s28 + $0x64] sm:$0xf] %vm995_vm2, %v1222_v21  ;;  %v1228_v62 = vpop.permute.xlu1 %1227 }
 0x289   : > { %1430 = vst.msk [vmem:[%s1886_s28 + $0x70] sm:$0xf] %vm995_vm2, %v1228_v62 }
 0x28b   : > { %v1226_v63 = vpop.permute.xlu0 %1225 }
 0x28c   : > { %1429 = vst.msk [vmem:[%s1886_s28 + $0x6c] sm:$0xf] %vm995_vm2, %v1226_v63  ;;  %v1224_v0 = vpop.permute.xlu1 %1223 }
 0x28d   : > { %1428 = vst.msk [vmem:[%s1886_s28 + $0x68] sm:$0xf] %vm995_vm2, %v1224_v0 }
 0x295   : > { %v1230_v1 = vpop.permute.xlu0 %1229 }
 0x296   : > { %1431 = vst.msk [vmem:[%s1886_s28 + $0x74] sm:$0xf] %vm995_vm2, %v1230_v1 }
 0x297   : > { %v1232_v2 = vpop.permute.xlu1 %1231 }
 0x298   : > { %1432 = vst.msk [vmem:[%s1886_s28 + $0x78] sm:$0xf] %vm995_vm2, %v1232_v2 }
 0x299   : > { %v1234_v3 = vpop.permute.xlu0 %1233 }
 0x29a   : > { %1433 = vst.msk [vmem:[%s1886_s28 + $0x7c] sm:$0xf] %vm995_vm2, %v1234_v3 }
 0x29b PF: > { %s14_s17 = sadd.s32 1, %s1697_s17   ;;  %s2066_s15 = smov %s1693_s16 }
 0x29c   : > { %p11_p5 = scmp.ge.s32.totalorder %s14_s17, 4   ;;  %s2067_s16 = smov %s2069_s18 }
 0x29e   :  { %13 = sbr.rel (!%p11_p5) target bundleno = 2 (0x2), region = 80 }

</bundles_post_ra>
